<compile_context>
chip_gen: v6e
topology: v6e:2x2x1
jax: 0.10.0
libtpu: 0.0.40
codegen_flags: <defaults>
</compile_context>

<pallas_src>
import jax
import jax.numpy as jnp
from jax.experimental import pallas as pl
from jax.experimental.pallas import tpu as pltpu


def _round_up(n, m):
    return ((n + m - 1) // m) * m


def mlp_kernel(x_ref, w1_ref, b1_ref, w2_ref, b2_ref, o_ref):
    # x_ref : [F, TB]   (F=5 features on sublanes, batch tile on lanes)
    # w1_ref: [H, F]    (H=50, PyTorch [out, in] layout)
    # b1_ref: [H, 1]
    # w2_ref: [H, 1]    (transpose of PyTorch [1, H])
    # b2_ref: [1, 1]    (SMEM scalar)
    # o_ref : [1, TB]
    xT = x_ref[...]                                            # [F, TB]
    w1 = w1_ref[...]                                           # [H, F]
    h = jnp.dot(w1, xT, preferred_element_type=jnp.float32)    # [H, TB] MXU
    h = jnp.maximum(h + b1_ref[...], 0.0)                      # bias + ReLU (VPU)
    # Second layer: 1-wide output -> broadcast-multiply + sublane reduce
    # instead of a heavily padded [*,50]@[50,1] MXU op.
    out = jnp.sum(h * w2_ref[...], axis=0, keepdims=True)      # [1, TB]
    o_ref[...] = out + b2_ref[0, 0]


def mlp_forward(x, w1, b1, w2, b2, *, block_b=1024):
    """x: [B, F] f32. Returns [B, 1] f32. Weights in transposed-kernel layout."""
    B, F = x.shape
    H = w1.shape[0]

    # Batch tile on the lane axis: multiple of 128, up to block_b.
    tb = min(block_b, _round_up(B, 128))
    Bp = _round_up(B, tb)

    xT = x.T                                                   # [F, B]
    if Bp != B:
        xT = jnp.pad(xT, ((0, 0), (0, Bp - B)))                # zero-pad lanes

    out_pad = pl.pallas_call(
        mlp_kernel,
        out_shape=jax.ShapeDtypeStruct((1, Bp), jnp.float32),
        grid=(Bp // tb,),
        in_specs=[
            pl.BlockSpec((F, tb), lambda i: (0, i)),           # x tile per grid step
            pl.BlockSpec((H, F), lambda i: (0, 0)),            # W1 resident in VMEM
            pl.BlockSpec((H, 1), lambda i: (0, 0)),            # b1 resident in VMEM
            pl.BlockSpec((H, 1), lambda i: (0, 0)),            # W2^T resident in VMEM
            pl.BlockSpec(memory_space=pltpu.MemorySpace.SMEM), # b2 scalar in SMEM
        ],
        out_specs=pl.BlockSpec((1, tb), lambda i: (0, i)),     # lane-dense store
        compiler_params=pltpu.CompilerParams(
            dimension_semantics=("parallel",),                 # 2 TCs on v7x
        ),
    )(xT, w1, b1, w2, b2)

    return out_pad[:, :B].T                                    # [B, 1]


def init_params(key):
    # Mirrors nn.Linear's uniform(-1/sqrt(fan_in), 1/sqrt(fan_in)) init,
    # stored in the kernel's transposed layout.
    k1, k2, k3, k4 = jax.random.split(key, 4)
    lim1 = 1.0 / jnp.sqrt(5.0)
    lim2 = 1.0 / jnp.sqrt(50.0)
    w1 = jax.random.uniform(k1, (50, 5), jnp.float32, -lim1, lim1)   # PyTorch [out,in]
    b1 = jax.random.uniform(k2, (50, 1), jnp.float32, -lim1, lim1)   # column bias
    w2 = jax.random.uniform(k3, (50, 1), jnp.float32, -lim2, lim2)   # W2.T
    b2 = jax.random.uniform(k4, (1, 1), jnp.float32, -lim2, lim2)    # scalar bias
    return w1, b1, w2, b2


if __name__ == "__main__":
    key = jax.random.PRNGKey(0)
    kx, kp = jax.random.split(key)
    batch = 8
    x = jax.random.normal(kx, (batch, 5), jnp.float32)
    w1, b1, w2, b2 = init_params(kp)

    out = mlp_forward(x, w1, b1, w2, b2)
    jax.block_until_ready(out)

    # Plain-JAX reference of the same math (PyTorch nn.Linear semantics).
    ref = jnp.maximum(x @ w1.T + b1.reshape(1, -1), 0.0) @ w2 + b2[0, 0]
    assert out.shape == (batch, 1)
    assert jnp.allclose(out, ref, atol=1e-5, rtol=1e-5)
    print("KERNEL_OK")
</pallas_src>

<mosaic_0001>
module attributes {stable_mosaic.version = 11 : i64} {
  func.func @mlp_kernel(%arg0: i32, %arg1: memref<5x128xf32, #tpu.memory_space<vmem>>, %arg2: memref<50x5xf32, #tpu.memory_space<vmem>>, %arg3: memref<50x1xf32, #tpu.memory_space<vmem>>, %arg4: memref<50x1xf32, #tpu.memory_space<vmem>>, %arg5: memref<1x1xf32, #tpu.memory_space<smem>>, %arg6: memref<1x128xf32, #tpu.memory_space<vmem>>) attributes {dimension_semantics = [#tpu.dimension_semantics<parallel>], iteration_bounds = array<i64: 1>, scalar_prefetch = 0 : i64, scratch_operands = 0 : i64, tpu.core_type = #tpu.core_type<tc>, window_params = [{transform_indices = @transform_0, window_bounds = array<i64: 5, 128>}, {pipeline_mode = #tpu.pipeline_mode<synchronous>, transform_indices = @transform_1, window_bounds = array<i64: 50, 5>}, {pipeline_mode = #tpu.pipeline_mode<synchronous>, transform_indices = @transform_2, window_bounds = array<i64: 50, 1>}, {pipeline_mode = #tpu.pipeline_mode<synchronous>, transform_indices = @transform_3, window_bounds = array<i64: 50, 1>}, {transform_indices = @transform_4, window_bounds = array<i64: 1, 1>}, {transform_indices = @transform_5, window_bounds = array<i64: 1, 128>}]} {
    %c0 = arith.constant 0 : index
    %c0_0 = arith.constant 0 : index
    %0 = vector.load %arg1[%c0, %c0_0] : memref<5x128xf32, #tpu.memory_space<vmem>>, vector<5x128xf32>
    %c0_1 = arith.constant 0 : index
    %c0_2 = arith.constant 0 : index
    %1 = vector.load %arg2[%c0_1, %c0_2] : memref<50x5xf32, #tpu.memory_space<vmem>>, vector<50x5xf32>
    %cst = arith.constant dense<0.000000e+00> : vector<50x128xf32>
    %2 = tpu.matmul %1, %0, %cst {dimension_numbers = #tpu.dot_dimension_numbers<[1], [0], [0], [1], [0, 0, 1, 1], [], []>} : vector<50x5xf32>, vector<5x128xf32>, vector<50x128xf32> -> vector<50x128xf32>
    %c0_3 = arith.constant 0 : index
    %c0_4 = arith.constant 0 : index
    %3 = vector.load %arg3[%c0_3, %c0_4] : memref<50x1xf32, #tpu.memory_space<vmem>>, vector<50x1xf32>
    %4 = vector.broadcast %3 : vector<50x1xf32> to vector<50x128xf32>
    %5 = arith.addf %2, %4 : vector<50x128xf32>
    %cst_5 = arith.constant 0.000000e+00 : f32
    %6 = vector.broadcast %cst_5 : f32 to vector<50x128xf32>
    %7 = arith.maximumf %5, %6 : vector<50x128xf32>
    %c0_6 = arith.constant 0 : index
    %c0_7 = arith.constant 0 : index
    %8 = vector.load %arg4[%c0_6, %c0_7] : memref<50x1xf32, #tpu.memory_space<vmem>>, vector<50x1xf32>
    %9 = vector.broadcast %8 : vector<50x1xf32> to vector<50x128xf32>
    %10 = arith.mulf %7, %9 : vector<50x128xf32>
    %cst_8 = arith.constant dense<0.000000e+00> : vector<128xf32>
    %11 = vector.multi_reduction <add>, %10, %cst_8 [0] : vector<50x128xf32> to vector<128xf32>
    %12 = vector.shape_cast %11 : vector<128xf32> to vector<1x128xf32>
    %c0_9 = arith.constant 0 : index
    %c0_10 = arith.constant 0 : index
    %13 = memref.load %arg5[%c0_9, %c0_10] : memref<1x1xf32, #tpu.memory_space<smem>>
    %14 = vector.broadcast %13 : f32 to vector<1x128xf32>
    %15 = arith.addf %12, %14 : vector<1x128xf32>
    %c0_11 = arith.constant 0 : index
    %c0_12 = arith.constant 0 : index
    %16 = vector.load %arg6[%c0_11, %c0_12] : memref<1x128xf32, #tpu.memory_space<vmem>>, vector<1x128xf32>
    tpu.vector_store %arg6[%c0_11, %c0_12], %15 {strides = array<i32>} : memref<1x128xf32, #tpu.memory_space<vmem>>, vector<1x128xf32>,
    return
  }
  func.func @transform_0(%arg0: i32) -> (i32, i32) {
    %c0_i32 = arith.constant 0 : i32
    %c0_i32_0 = arith.constant 0 : i32
    return %c0_i32, %arg0 : i32, i32
  }
  func.func @transform_1(%arg0: i32) -> (i32, i32) {
    %c0_i32 = arith.constant 0 : i32
    %c0_i32_0 = arith.constant 0 : i32
    %c0_i32_1 = arith.constant 0 : i32
    return %c0_i32, %c0_i32_0 : i32, i32
  }
  func.func @transform_2(%arg0: i32) -> (i32, i32) {
    %c0_i32 = arith.constant 0 : i32
    %c0_i32_0 = arith.constant 0 : i32
    %c0_i32_1 = arith.constant 0 : i32
    return %c0_i32, %c0_i32_0 : i32, i32
  }
  func.func @transform_3(%arg0: i32) -> (i32, i32) {
    %c0_i32 = arith.constant 0 : i32
    %c0_i32_0 = arith.constant 0 : i32
    %c0_i32_1 = arith.constant 0 : i32
    return %c0_i32, %c0_i32_0 : i32, i32
  }
  func.func @transform_4(%arg0: i32) -> (i32, i32) {
    %c0_i32 = arith.constant 0 : i32
    %c0_i32_0 = arith.constant 0 : i32
    %c0_i32_1 = arith.constant 0 : i32
    return %c0_i32, %c0_i32_0 : i32, i32
  }
  func.func @transform_5(%arg0: i32) -> (i32, i32) {
    %c0_i32 = arith.constant 0 : i32
    %c0_i32_0 = arith.constant 0 : i32
    return %c0_i32, %arg0 : i32, i32
  }
}

</mosaic_0001>

<bundles_post_ra>
// kernel: tpu_custom_call.1
= control target key start
LH: loop header
LB: loop body
LE: loop exit
PB: predicated region body
PF: predicated region fallthrough
CT: control target
= control target key end

     0   :  { %vm94_vm0 = vcmask 1044480   ;;  %v355_v1 = vmov 0.0   ;;  %vm72_vm1 = vcmask 39936   ;;  %vm356_vm2 = vmmov 0   ;;  %s475_s0 = inlined_call_operand.vmem [shape: f32[5,128], index: 0, kind: input, shape index: {}]   ;;  %s476_s1 = inlined_call_operand.vmem [shape: f32[50,5], index: 1, kind: input, shape index: {}]   ;;  %s477_s2 = inlined_call_operand.vmem [shape: f32[50,1], index: 2, kind: input, shape index: {}]   ;;  %s478_s3 = inlined_call_operand.vmem [shape: f32[50,1], index: 3, kind: input, shape index: {}]   ;;  %s479_s4 = inlined_call_operand.<no memory space> [shape: f32[1,1], index: 4, kind: input, shape index: {}]   ;;  %s480_s5 = inlined_call_operand.hbm [shape: f32[1,128], index: 5, kind: output, shape index: {}]  }
   0x1   :  { %v22_v0 = vld [vmem:[%s475_s0] sm:$0x1f]  ;;  %302 = vmatprep.subr.mxu0 %v355_v1  ;;  %325 = vmatprep.subr.mxu1 %v355_v1  ;;  %v32_v5 = vld [vmem:[%s477_s2 + $0x10] sm:$0xff]  ;;  %v24_v6 = vld [vmem:[%s476_s1 + $0x8] sm:$0xff]  ;;  %v357_v8 = vmov 0  }
   0x2   :  { %v23_v2 = vld [vmem:[%s476_s1] sm:$0xff]  ;;  %303 = vmatpush3.msk.msra.mxu0 %vm94_vm0, %v22_v0  ;;  %326 = vmatpush3.msk.msra.mxu1 %vm94_vm0, %v22_v0  ;;  %v28_v7 = vld [vmem:[%s476_s1 + $0x28] sm:$0xff] }
   0x3   :  { %v27_v3 = vld [vmem:[%s476_s1 + $0x20] sm:$0xff]  ;;  %304 = vmatprep.mubr.msk.f32.mxu0 %vm356_vm2, %v355_v1  ;;  %316 = vmatprep.mubr.msk.f32.mxu1 %vm356_vm2, %v355_v1 }
   0x4   :  { %305 = vmatmul.mubr.msk.f32.vlgmr.msra.gmra.mxu0 %vm72_vm1, %v23_v2  ;;  %317 = vmatmul.mubr.msk.f32.vlgmr.msra.gmra.mxu1 %vm72_vm1, %v27_v3  ;;  %v30_v4 = vld [vmem:[%s477_s2] sm:$0xff] }
   0x5   :  { %307 = vmatprep.mubr.msk.f32.mxu0 %vm356_vm2, %v355_v1  ;;  %319 = vmatprep.mubr.msk.f32.mxu1 %vm356_vm2, %v355_v1 }
   0x6   :  { %331 = vset.pattern.permute.xlu0 %v357_v8  ;;  %332 = vset.pattern.permute.xlu1 %v357_v8 }
   0x7   :  { %39 = vperm.xlu0 %331, %v30_v4   ;;  %49 = vperm.xlu1 %332, %v32_v5  }
   0x8   :  { %11 = vsyncpa [#allocation4], 0  ;;  %308 = vmatmul.mubr.msk.f32.gmra.mxu0 %vm72_vm1, %v24_v6  ;;  %320 = vmatmul.mubr.msk.f32.gmra.mxu1 %vm72_vm1, %v28_v7  ;;  %v31_v9 = vld [vmem:[%s477_s2 + $0x8] sm:$0xff]  ;;  %v33_v10 = vld [vmem:[%s477_s2 + $0x18] sm:$0xff]  ;;  %vm259_vm3 = vcmask 1041408   ;;  %s358_s9 = smov [#allocation3]  }
   0x9   :  { %310 = vmatprep.mubr.msk.f32.mxu0 %vm356_vm2, %v355_v1  ;;  %322 = vmatprep.mubr.msk.f32.mxu1 %vm356_vm2, %v355_v1  ;;  %v25_v11 = vld [vmem:[%s476_s1 + $0x10] sm:$0xff]  ;;  %v205_v13 = vld [vmem:[%s478_s3] sm:$0xff]  ;;  %v206_v14 = vld [vmem:[%s478_s3 + $0x8] sm:$0xff]  ;;  %s278_s10 = sshll.u32 %s358_s9, 4  ;;  %s279_s10 = int_to_ptr.vmem [resolvable:$true] %s278_s10 }
   0xa   :  { %v29_v12 = vld [vmem:[%s476_s1 + $0x30] sm:$0x3]  ;;  %v26_v15 = vld [vmem:[%s476_s1 + $0x18] sm:$0xff]  ;;  %v34_v16 = vld [vmem:[%s477_s2 + $0x20] sm:$0xff]  ;;  %s333_s11 = scalar_lea.vmem %s279_s10, 16  ;;  %s337_s12 = scalar_lea.vmem %s279_s10, 32 }
   0xb   :  { %44 = vperm.xlu0 %331, %v31_v9   ;;  %54 = vperm.xlu1 %332, %v33_v10   ;;  %v207_v17 = vld [vmem:[%s478_s3 + $0x10] sm:$0xff]  ;;  %v35_v18 = vld [vmem:[%s477_s2 + $0x28] sm:$0xff]  ;;  %v208_v19 = vld [vmem:[%s478_s3 + $0x18] sm:$0xff]  ;;  %p334_p0 = scmp.ne.s32.totalorder %s279_s10, %s333_s11  ;;  %p338_p1 = scmp.lt.s32.totalorder %s279_s10, %s279_s10 }
   0xc   :  { %311 = vmatmul.mubr.msk.f32.gmra.mxu0 %vm72_vm1, %v25_v11  ;;  %323 = vmatmul.mubr.msk.f32.gmra.mxu1 %vm72_vm1, %v29_v12  ;;  %v36_v20 = vld [vmem:[%s477_s2 + $0x30] sm:$0x3]  ;;  %v209_v21 = vld [vmem:[%s478_s3 + $0x20] sm:$0xff]  ;;  %v210_v22 = vld [vmem:[%s478_s3 + $0x28] sm:$0xff]  ;;  %p339_p2 = scmp.lt.s32.totalorder %s337_s12, %s333_s11 }
   0xd   :  { %313 = vmatprep.mubr.msk.f32.mxu0 %vm356_vm2, %v355_v1  ;;  %v211_v23 = vld [vmem:[%s478_s3 + $0x30] sm:$0x3] }
   0xe   :  { %p340_p3 = por %p339_p2, %p338_p1 }
   0xf   :  { %214 = vperm.xlu0 %331, %v205_v13   ;;  %219 = vperm.xlu1 %332, %v206_v14  }
  0x10   :  { %314 = vmatmul.mubr.msk.f32.gmra.mxu0 %vm72_vm1, %v26_v15  ;;  %p341_p4 = pnand %p340_p3, %p334_p0 }
  0x13   :  { %59 = vperm.xlu0 %331, %v34_v16   ;;  %224 = vperm.xlu1 %332, %v207_v17  }
  0x17   :  { %64 = vperm.xlu0 %331, %v35_v18   ;;  %229 = vperm.xlu1 %332, %v208_v19  }
  0x1b   :  { %69 = vperm.xlu0 %331, %v36_v20   ;;  %234 = vperm.xlu1 %332, %v209_v21   ;;  %v269_v21 = vstv %s479_s4 }
  0x1f   :  { %239 = vperm.xlu0 %331, %v210_v22   ;;  %244 = vperm.xlu1 %332, %v211_v23  }
  0x82   :  { %v40_v24 = vpop.permute.xlu0 %39  ;;  %v50_v25 = vpop.permute.xlu1 %49 }
  0x86   :  { %v45_v26 = vpop.permute.xlu0 %44  ;;  %v55_v27 = vpop.permute.xlu1 %54 }
  0x8a   :  { %v215_v28 = vpop.permute.xlu0 %214  ;;  %v220_v29 = vpop.permute.xlu1 %219 }
  0x8e   :  { %v60_v30 = vpop.permute.xlu0 %59  ;;  %v225_v33 = vpop.permute.xlu1 %224 }
  0x92   :  { %v65_v38 = vpop.permute.xlu0 %64  ;;  %v230_v43 = vpop.permute.xlu1 %229 }
  0x96   :  { %v70_v51 = vpop.permute.xlu0 %69  ;;  %v235_v57 = vpop.permute.xlu1 %234 }
  0x9a   :  { %v245_v6 = vpop.permute.xlu1 %244  ;;  %v240_v9 = vpop.permute.xlu0 %239 }
  0xc4   :  { %v164_v31 = vpop.f32.mrf.mxu0  ;;  %v184_v32 = vpop.f32.mrf.mxu1 }
  0xc5   :  { %v165_v39 = vadd.f32 %v164_v31, %v40_v24  ;;  %v185_v52 = vadd.f32 %v184_v32, %v60_v30 }
  0xc6   :  { %v306_v34 = vpop.f32.mrf.mxu0  ;;  %v318_v35 = vpop.f32.mrf.mxu1 }
  0xc7   :  { %v198_v47 = vmax.f32 %v165_v39, 0.0  ;;  %v202_v63 = vmax.f32 %v185_v52, 0.0 }
  0xc8   :  { %v169_v36 = vpop.f32.mrf.mxu0  ;;  %v189_v37 = vpop.f32.mrf.mxu1 }
  0xc9   :  { %v170_v40 = vadd.f32 %v169_v36, %v45_v26  ;;  %v247_v58 = vmul.f32 %v215_v28, %v198_v47  ;;  %v190_v59 = vadd.f32 %v189_v37, %v65_v38  ;;  %v251_v7 = vmul.f32 %v235_v57, %v202_v63 }
  0xca   :  { %v309_v41 = vpop.f32.mrf.mxu0  ;;  %v321_v42 = vpop.f32.mrf.mxu1 }
  0xcb   :  { %v199_v44 = vmax.f32 %v170_v40, 0.0  ;;  %v203_v3 = vmax.f32 %v190_v59, 0.0 }
  0xcc   :  { %v174_v45 = vpop.f32.mrf.mxu0  ;;  %v194_v46 = vpop.f32.mrf.mxu1 }
  0xcd   :  { %v175_v48 = vadd.f32 %v174_v45, %v50_v25  ;;  %v248_v53 = vmul.f32 %v220_v29, %v199_v44  ;;  %v195_v55 = vadd.f32 %v194_v46, %v70_v51  ;;  %v252_v11 = vmul.f32 %v240_v9, %v203_v3 }
  0xce   :  { %v312_v49 = vpop.f32.mrf.mxu0  ;;  %v324_v50 = vpop.f32.mrf.mxu1 }
  0xcf   :  { %v200_v54 = vmax.f32 %v175_v48, 0.0  ;;  %v254_v0 = vadd.f32 %v248_v53, %v247_v58  ;;  %v204_v2 = vmax.f32 %v195_v55, 0.0 }
  0xd0   :  { %v179_v56 = vpop.f32.mrf.mxu0 }
  0xd1   :  { %v249_v60 = vmul.f32 %v225_v33, %v200_v54  ;;  %v180_v61 = vadd.f32 %v179_v56, %v55_v27  ;;  %v253_v10 = vmul.f32 %v245_v6, %v204_v2 }
  0xd2   :  { %v315_v62 = vpop.f32.mrf.mxu0 }
  0xd3   :  { %v201_v1 = vmax.f32 %v180_v61, 0.0  ;;  %v255_v4 = vadd.f32 %v254_v0, %v249_v60  ;;  %v260_v14 = vsel %vm259_vm3, %v253_v10, 0.0 }
  0xd5   :  { %v250_v5 = vmul.f32 %v230_v43, %v201_v1 }
  0xd7   :  { %v256_v8 = vadd.f32 %v255_v4, %v250_v5 }
  0xd9   :  { %v257_v12 = vadd.f32 %v256_v8, %v251_v7 }
  0xdb   :  { %v258_v13 = vadd.f32 %v257_v12, %v252_v11 }
  0xdd   :  { %v261_v15 = vadd.f32 %v260_v14, %v258_v13 }
  0xdf   :  { %v262_v16 = vrot.slane %v261_v15, 4 }
  0xe1   :  { %v263_v17 = vadd.f32 %v262_v16, %v261_v15 }
  0xe3   :  { %v264_v18 = vrot.slane %v263_v17, 2 }
  0xe5   :  { %v265_v19 = vadd.f32 %v264_v18, %v263_v17 }
  0xe7   :  { %v266_v20 = vrot.slane %v265_v19, 1 }
  0xe9   :  { %v267_v22 = vadd.f32 %v266_v20, %v265_v19 }
  0xeb   :  { %v270_v23 = vadd.f32 %v269_v21, %v267_v22 }
  0xed   :  { %271 = vst [vmem:[#allocation3] sm:$0x1] %v270_v23 }
  0xee   :  { %344 = shalt.err (!%p341_p4)
}
  0xef   :  { %281 = dma.vmem_to_hbm [thread:$0]  %s279_s10, 16, %s480_s5, [#allocation4]  }
  0xf0   :  { %353 = dma.done.wait [#allocation4], 16  }
  0xf1   :  { %354 = vsyncadd [#allocation4], 4294967280 }
  0xf2   :  { %285 = vsyncpa [#allocation4], 1 }

</bundles_post_ra>
